<compile_context>
chip_gen: v6e
topology: v6e:2x2x1
jax: 0.10.0
libtpu: 0.0.40
codegen_flags: <defaults>
</compile_context>

<pallas_src>
import jax
import jax.numpy as jnp
from jax import lax
from jax.experimental import pallas as pl
from jax.experimental.pallas import tpu as pltpu


BN_EPS = 1e-5


def _round_up(x, m):
    return (x + m - 1) // m * m


def basic_model_kernel(nvalid_ref,            # SMEM scalar prefetch: [1] int32 (valid batch size)
                       x_ref,                 # [F, BT]  (batch on lanes)
                       w1_ref, b1_ref,        # [16, F], [16, 1]
                       w2_ref, b2_ref,        # [8, 16], [8, 1]
                       w3_ref, b3_ref,        # [4, 8],  [4, 1]
                       w4_ref, b4_ref,        # [1, 4],  [1, 1]   (BN affine pre-folded)
                       o_ref,                 # [1, BT]
                       h3_ref,                # VMEM scratch [num_tiles, 4, BT] (staged h3)
                       sum_ref, sumsq_ref):   # VMEM scratch, [4, 1] each
    phase = pl.program_id(0)   # 0: fc1-3 + accumulate BN stats, 1: normalize + output
    tile = pl.program_id(1)    # batch tile index

    @pl.when(jnp.logical_and(phase == 0, tile == 0))
    def _init_stats():
        sum_ref[...] = jnp.zeros_like(sum_ref)
        sumsq_ref[...] = jnp.zeros_like(sumsq_ref)

    @pl.when(phase == 0)
    def _forward_and_stats():
        x = x_ref[...]                                                           # [F, BT]
        h = jnp.dot(w1_ref[...], x, preferred_element_type=jnp.float32) + b1_ref[...]
        h = jnp.maximum(h, 0.0)                                                  # [16, BT]
        h = jnp.dot(w2_ref[...], h, preferred_element_type=jnp.float32) + b2_ref[...]
        h = jnp.maximum(h, 0.0)                                                  # [8, BT]
        h3 = jnp.dot(w3_ref[...], h, preferred_element_type=jnp.float32) + b3_ref[...]
        h3 = jnp.maximum(h3, 0.0)                                                # [4, BT]

        # Stage h3 for phase 1 so x is never re-read and fc1-3 never recomputed.
        h3_ref[tile] = h3

        bt = h3.shape[1]
        col = tile * bt + lax.broadcasted_iota(jnp.int32, h3.shape, 1)
        valid = col < nvalid_ref[0]                 # mask out batch padding columns
        h3m = jnp.where(valid, h3, 0.0)
        sum_ref[...] += jnp.sum(h3m, axis=1, keepdims=True)
        sumsq_ref[...] += jnp.sum(h3m * h3m, axis=1, keepdims=True)

    @pl.when(phase == 1)
    def _normalize_and_output():
        count = nvalid_ref[0].astype(jnp.float32)
        mean = sum_ref[...] / count                 # [4, 1]
        var = sumsq_ref[...] / count - mean * mean  # biased variance (train-mode BN)
        rstd = lax.rsqrt(var + BN_EPS)
        h_hat = (h3_ref[tile] - mean) * rstd        # [4, BT]
        # fc4 (BN affine folded into w4_ref / b4_ref by the wrapper).
        z = jnp.dot(w4_ref[...], h_hat, preferred_element_type=jnp.float32) + b4_ref[...]
        # sigmoid via EUP exp + approximate EUP reciprocal (free slot; ~2e-4 rel err).
        o_ref[...] = pl.reciprocal(1.0 + jnp.exp(-z), approx=True)


def basic_model_forward(x, params, *, batch_tile=512):
    """x: [B, input_dim] float32  ->  [B, 1] float32 sigmoid probabilities."""
    B, F = x.shape

    # Batch on the lane axis; pad the batch so tiles are lane-dense (x128).
    if B <= batch_tile:
        bt = _round_up(B, 128)
        b_pad = bt
    else:
        bt = batch_tile
        b_pad = _round_up(B, bt)
    xt = x.T                                        # [F, B]
    if b_pad != B:
        xt = jnp.pad(xt, ((0, 0), (0, b_pad - B)))
    num_tiles = b_pad // bt

    # Fold the BatchNorm affine (gamma, beta) into fc4.
    w4f = params["w4"] * params["gamma"].T               # [1, 4]
    b4f = params["b4"] + params["w4"] @ params["beta"]   # [1, 1]

    nvalid = jnp.array([B], dtype=jnp.int32)

    def x_map(p, t, nv):
        # Phase 0 walks the batch tiles; phase 1 never touches x, so pin the
        # block index to the last tile -> zero additional x DMAs in phase 1.
        return (0, t * (1 - p) + (num_tiles - 1) * p)

    def const_map(p, t, nv):        # weights stay resident across grid steps
        return (0, 0)

    def out_map(p, t, nv):
        # Phase 0 pins the output block (never written, never flushed);
        # phase 1 walks the batch tiles with real data.
        return (0, p * t)

    grid_spec = pltpu.PrefetchScalarGridSpec(
        num_scalar_prefetch=1,
        grid=(2, num_tiles),                         # (phase, batch tile)
        in_specs=[
            pl.BlockSpec((F, bt), x_map),
            pl.BlockSpec((16, F), const_map), pl.BlockSpec((16, 1), const_map),
            pl.BlockSpec((8, 16), const_map), pl.BlockSpec((8, 1), const_map),
            pl.BlockSpec((4, 8), const_map), pl.BlockSpec((4, 1), const_map),
            pl.BlockSpec((1, 4), const_map), pl.BlockSpec((1, 1), const_map),
        ],
        out_specs=pl.BlockSpec((1, bt), out_map),
        scratch_shapes=[pltpu.VMEM((num_tiles, 4, bt), jnp.float32),  # staged h3
                        pltpu.VMEM((4, 1), jnp.float32),              # sum
                        pltpu.VMEM((4, 1), jnp.float32)],             # sum of squares
    )

    out = pl.pallas_call(
        basic_model_kernel,
        out_shape=jax.ShapeDtypeStruct((1, b_pad), jnp.float32),
        grid_spec=grid_spec,
        compiler_params=pltpu.CompilerParams(
            # BN statistics are a sequential cross-tile reduction into shared
            # scratch, so neither grid axis can be megacore-parallel.
            dimension_semantics=("arbitrary", "arbitrary"),
            vmem_limit_bytes=32 * 1024 * 1024,       # safe on v7x's 64 MiB VMEM
        ),
    )(nvalid, xt,
      params["w1"], params["b1"],
      params["w2"], params["b2"],
      params["w3"], params["b3"],
      w4f, b4f)

    return out[:, :B].T                              # [B, 1]


def init_params(key, input_dim=13):
    """Deterministic synthetic parameters in PyTorch (out, in) layout."""
    ks = jax.random.split(key, 10)

    def linear(kw, kb, fan_in, fan_out):
        bound = 1.0 / jnp.sqrt(float(fan_in))
        w = jax.random.uniform(kw, (fan_out, fan_in), jnp.float32, -bound, bound)
        b = jax.random.uniform(kb, (fan_out, 1), jnp.float32, -bound, bound)
        return w, b

    w1, b1 = linear(ks[0], ks[1], input_dim, 16)
    w2, b2 = linear(ks[2], ks[3], 16, 8)
    w3, b3 = linear(ks[4], ks[5], 8, 4)
    w4, b4 = linear(ks[6], ks[7], 4, 1)
    # Non-trivial BN affine so the fold into fc4 is actually exercised.
    gamma = jax.random.uniform(ks[8], (4, 1), jnp.float32, 0.5, 1.5)
    beta = jax.random.uniform(ks[9], (4, 1), jnp.float32, -0.5, 0.5)
    return dict(w1=w1, b1=b1, w2=w2, b2=b2, w3=w3, b3=b3,
                gamma=gamma, beta=beta, w4=w4, b4=b4)


def reference_forward(x, p):
    """Pure-JAX reference (PyTorch layout, training-mode BatchNorm)."""
    h = jnp.maximum(x @ p["w1"].T + p["b1"].T, 0.0)
    h = jnp.maximum(h @ p["w2"].T + p["b2"].T, 0.0)
    h = jnp.maximum(h @ p["w3"].T + p["b3"].T, 0.0)
    mean = jnp.mean(h, axis=0, keepdims=True)
    var = jnp.mean((h - mean) ** 2, axis=0, keepdims=True)
    h = (h - mean) / jnp.sqrt(var + BN_EPS) * p["gamma"].T + p["beta"].T
    z = h @ p["w4"].T + p["b4"].T
    return jax.nn.sigmoid(z)


if __name__ == "__main__":
    key = jax.random.PRNGKey(0)
    kx1, kx2, kp = jax.random.split(key, 3)

    INPUT_DIM = 13
    params = init_params(kp, INPUT_DIM)

    # Small batch: one padded 128-lane tile; exercises the padding mask in the
    # BN-statistics pass.  Tolerance accounts for the approximate EUP
    # reciprocal used in the sigmoid.
    B1 = 16
    x1 = jax.random.normal(kx1, (B1, INPUT_DIM), jnp.float32)
    out1 = jax.block_until_ready(basic_model_forward(x1, params))
    ref1 = reference_forward(x1, params)
    assert out1.shape == (B1, 1)
    assert jnp.allclose(out1, ref1, atol=5e-3, rtol=0), "mismatch vs reference (B=16)"

    # Multi-tile batch: grid over batch tiles, cross-tile full-batch BN stats,
    # and phase-1 reuse of the staged h3 slab.
    B2 = 300
    x2 = jax.random.normal(kx2, (B2, INPUT_DIM), jnp.float32)
    out2 = jax.block_until_ready(basic_model_forward(x2, params, batch_tile=128))
    ref2 = reference_forward(x2, params)
    assert out2.shape == (B2, 1)
    assert jnp.allclose(out2, ref2, atol=5e-3, rtol=0), "mismatch vs reference (B=300)"

    print("KERNEL_OK")
</pallas_src>

<mosaic_0001>
module attributes {stable_mosaic.version = 11 : i64} {
  func.func @basic_model_kernel(%arg0: i32, %arg1: i32, %arg2: memref<1xi32, #tpu.memory_space<smem>>, %arg3: memref<13x128xf32, #tpu.memory_space<vmem>>, %arg4: memref<16x13xf32, #tpu.memory_space<vmem>>, %arg5: memref<16x1xf32, #tpu.memory_space<vmem>>, %arg6: memref<8x16xf32, #tpu.memory_space<vmem>>, %arg7: memref<8x1xf32, #tpu.memory_space<vmem>>, %arg8: memref<4x8xf32, #tpu.memory_space<vmem>>, %arg9: memref<4x1xf32, #tpu.memory_space<vmem>>, %arg10: memref<1x4xf32, #tpu.memory_space<vmem>>, %arg11: memref<1x1xf32, #tpu.memory_space<vmem>>, %arg12: memref<1x128xf32, #tpu.memory_space<vmem>>, %arg13: memref<1x4x128xf32, #tpu.memory_space<vmem>>, %arg14: memref<4x1xf32, #tpu.memory_space<vmem>>, %arg15: memref<4x1xf32, #tpu.memory_space<vmem>>) attributes {dimension_semantics = [#tpu.dimension_semantics<arbitrary>, #tpu.dimension_semantics<arbitrary>], iteration_bounds = array<i64: 2, 1>, scalar_prefetch = 1 : i64, scratch_operands = 3 : i64, tpu.core_type = #tpu.core_type<tc>, window_params = [{transform_indices = @transform_0, window_bounds = array<i64: 13, 128>}, {pipeline_mode = #tpu.pipeline_mode<synchronous>, transform_indices = @transform_1, window_bounds = array<i64: 16, 13>}, {pipeline_mode = #tpu.pipeline_mode<synchronous>, transform_indices = @transform_2, window_bounds = array<i64: 16, 1>}, {pipeline_mode = #tpu.pipeline_mode<synchronous>, transform_indices = @transform_3, window_bounds = array<i64: 8, 16>}, {pipeline_mode = #tpu.pipeline_mode<synchronous>, transform_indices = @transform_4, window_bounds = array<i64: 8, 1>}, {pipeline_mode = #tpu.pipeline_mode<synchronous>, transform_indices = @transform_5, window_bounds = array<i64: 4, 8>}, {pipeline_mode = #tpu.pipeline_mode<synchronous>, transform_indices = @transform_6, window_bounds = array<i64: 4, 1>}, {pipeline_mode = #tpu.pipeline_mode<synchronous>, transform_indices = @transform_7, window_bounds = array<i64: 1, 4>}, {pipeline_mode = #tpu.pipeline_mode<synchronous>, transform_indices = @transform_8, window_bounds = array<i64: 1, 1>}, {transform_indices = @transform_9, window_bounds = array<i64: 1, 128>}]} {
    %c0_i32 = arith.constant 0 : i32
    %0 = arith.cmpi eq, %arg0, %c0_i32 : i32
    %c0_i32_0 = arith.constant 0 : i32
    %1 = arith.cmpi eq, %arg1, %c0_i32_0 : i32
    %2 = arith.andi %0, %1 : i1
    %3 = arith.extui %2 : i1 to i32
    %c0_i32_1 = arith.constant 0 : i32
    %4 = arith.cmpi ne, %3, %c0_i32_1 : i32
    scf.if %4 {
      %cst = arith.constant 0.000000e+00 : f32
      %11 = vector.broadcast %cst : f32 to vector<4x1xf32>
      %c0 = arith.constant 0 : index
      %c0_5 = arith.constant 0 : index
      %12 = vector.load %arg14[%c0, %c0_5] : memref<4x1xf32, #tpu.memory_space<vmem>>, vector<4x1xf32>
      tpu.vector_store %arg14[%c0, %c0_5], %11 {strides = array<i32>} : memref<4x1xf32, #tpu.memory_space<vmem>>, vector<4x1xf32>,
      %cst_6 = arith.constant 0.000000e+00 : f32
      %13 = vector.broadcast %cst_6 : f32 to vector<4x1xf32>
      %c0_7 = arith.constant 0 : index
      %c0_8 = arith.constant 0 : index
      %14 = vector.load %arg15[%c0_7, %c0_8] : memref<4x1xf32, #tpu.memory_space<vmem>>, vector<4x1xf32>
      tpu.vector_store %arg15[%c0_7, %c0_8], %13 {strides = array<i32>} : memref<4x1xf32, #tpu.memory_space<vmem>>, vector<4x1xf32>,
    } else {
    }
    %c0_i32_2 = arith.constant 0 : i32
    %5 = arith.cmpi eq, %arg0, %c0_i32_2 : i32
    %6 = arith.extui %5 : i1 to i32
    %c0_i32_3 = arith.constant 0 : i32
    %7 = arith.cmpi ne, %6, %c0_i32_3 : i32
    scf.if %7 {
      %c0 = arith.constant 0 : index
      %c0_5 = arith.constant 0 : index
      %11 = vector.load %arg3[%c0, %c0_5] : memref<13x128xf32, #tpu.memory_space<vmem>>, vector<13x128xf32>
      %c0_6 = arith.constant 0 : index
      %c0_7 = arith.constant 0 : index
      %12 = vector.load %arg4[%c0_6, %c0_7] : memref<16x13xf32, #tpu.memory_space<vmem>>, vector<16x13xf32>
      %cst = arith.constant dense<0.000000e+00> : vector<16x128xf32>
      %13 = tpu.matmul %12, %11, %cst {dimension_numbers = #tpu.dot_dimension_numbers<[1], [0], [0], [1], [0, 0, 1, 1], [], []>} : vector<16x13xf32>, vector<13x128xf32>, vector<16x128xf32> -> vector<16x128xf32>
      %c0_8 = arith.constant 0 : index
      %c0_9 = arith.constant 0 : index
      %14 = vector.load %arg5[%c0_8, %c0_9] : memref<16x1xf32, #tpu.memory_space<vmem>>, vector<16x1xf32>
      %15 = vector.broadcast %14 : vector<16x1xf32> to vector<16x128xf32>
      %16 = arith.addf %13, %15 : vector<16x128xf32>
      %cst_10 = arith.constant 0.000000e+00 : f32
      %17 = vector.broadcast %cst_10 : f32 to vector<16x128xf32>
      %18 = arith.maximumf %16, %17 : vector<16x128xf32>
      %c0_11 = arith.constant 0 : index
      %c0_12 = arith.constant 0 : index
      %19 = vector.load %arg6[%c0_11, %c0_12] : memref<8x16xf32, #tpu.memory_space<vmem>>, vector<8x16xf32>
      %cst_13 = arith.constant dense<0.000000e+00> : vector<8x128xf32>
      %20 = tpu.matmul %19, %18, %cst_13 {dimension_numbers = #tpu.dot_dimension_numbers<[1], [0], [0], [1], [0, 0, 1, 1], [], []>} : vector<8x16xf32>, vector<16x128xf32>, vector<8x128xf32> -> vector<8x128xf32>
      %c0_14 = arith.constant 0 : index
      %c0_15 = arith.constant 0 : index
      %21 = vector.load %arg7[%c0_14, %c0_15] : memref<8x1xf32, #tpu.memory_space<vmem>>, vector<8x1xf32>
      %22 = vector.broadcast %21 : vector<8x1xf32> to vector<8x128xf32>
      %23 = arith.addf %20, %22 : vector<8x128xf32>
      %cst_16 = arith.constant 0.000000e+00 : f32
      %24 = vector.broadcast %cst_16 : f32 to vector<8x128xf32>
      %25 = arith.maximumf %23, %24 : vector<8x128xf32>
      %c0_17 = arith.constant 0 : index
      %c0_18 = arith.constant 0 : index
      %26 = vector.load %arg8[%c0_17, %c0_18] : memref<4x8xf32, #tpu.memory_space<vmem>>, vector<4x8xf32>
      %cst_19 = arith.constant dense<0.000000e+00> : vector<4x128xf32>
      %27 = tpu.matmul %26, %25, %cst_19 {dimension_numbers = #tpu.dot_dimension_numbers<[1], [0], [0], [1], [0, 0, 1, 1], [], []>} : vector<4x8xf32>, vector<8x128xf32>, vector<4x128xf32> -> vector<4x128xf32>
      %c0_20 = arith.constant 0 : index
      %c0_21 = arith.constant 0 : index
      %28 = vector.load %arg9[%c0_20, %c0_21] : memref<4x1xf32, #tpu.memory_space<vmem>>, vector<4x1xf32>
      %29 = vector.broadcast %28 : vector<4x1xf32> to vector<4x128xf32>
      %30 = arith.addf %27, %29 : vector<4x128xf32>
      %cst_22 = arith.constant 0.000000e+00 : f32
      %31 = vector.broadcast %cst_22 : f32 to vector<4x128xf32>
      %32 = arith.maximumf %30, %31 : vector<4x128xf32>
      %33 = arith.index_cast %arg1 : i32 to index
      %c0_23 = arith.constant 0 : index
      %c0_24 = arith.constant 0 : index
      %34 = vector.load %arg13[%33, %c0_23, %c0_24] : memref<1x4x128xf32, #tpu.memory_space<vmem>>, vector<1x4x128xf32>
      %35 = vector.shape_cast %34 : vector<1x4x128xf32> to vector<4x128xf32>
      %36 = vector.shape_cast %32 : vector<4x128xf32> to vector<1x4x128xf32>
      tpu.vector_store %arg13[%33, %c0_23, %c0_24], %36 {strides = array<i32>} : memref<1x4x128xf32, #tpu.memory_space<vmem>>, vector<1x4x128xf32>,
      %c128_i32 = arith.constant 128 : i32
      %37 = arith.muli %arg1, %c128_i32 : i32
      %38 = tpu.iota {dimensions = array<i32: 1>} : vector<4x128xi32>
      %39 = vector.broadcast %37 : i32 to vector<4x128xi32>
      %40 = arith.addi %39, %38 : vector<4x128xi32>
      %c0_25 = arith.constant 0 : index
      %41 = memref.load %arg2[%c0_25] : memref<1xi32, #tpu.memory_space<smem>>
      %42 = vector.broadcast %41 : i32 to vector<4x128xi32>
      %43 = arith.cmpi slt, %40, %42 : vector<4x128xi32>
      %cst_26 = arith.constant 0.000000e+00 : f32
      %44 = vector.broadcast %cst_26 : f32 to vector<4x128xf32>
      %45 = arith.select %43, %32, %44 : vector<4x128xi1>, vector<4x128xf32>
      %c0_27 = arith.constant 0 : index
      %c0_28 = arith.constant 0 : index
      %46 = vector.load %arg14[%c0_27, %c0_28] : memref<4x1xf32, #tpu.memory_space<vmem>>, vector<4x1xf32>
      %cst_29 = arith.constant dense<0.000000e+00> : vector<4xf32>
      %47 = vector.multi_reduction <add>, %45, %cst_29 [1] : vector<4x128xf32> to vector<4xf32>
      %48 = vector.shape_cast %47 : vector<4xf32> to vector<4x1xf32>
      %49 = arith.addf %46, %48 : vector<4x1xf32>
      %c0_30 = arith.constant 0 : index
      %c0_31 = arith.constant 0 : index
      %50 = vector.load %arg14[%c0_30, %c0_31] : memref<4x1xf32, #tpu.memory_space<vmem>>, vector<4x1xf32>
      tpu.vector_store %arg14[%c0_30, %c0_31], %49 {strides = array<i32>} : memref<4x1xf32, #tpu.memory_space<vmem>>, vector<4x1xf32>,
      %c0_32 = arith.constant 0 : index
      %c0_33 = arith.constant 0 : index
      %51 = vector.load %arg15[%c0_32, %c0_33] : memref<4x1xf32, #tpu.memory_space<vmem>>, vector<4x1xf32>
      %52 = arith.mulf %45, %45 : vector<4x128xf32>
      %cst_34 = arith.constant dense<0.000000e+00> : vector<4xf32>
      %53 = vector.multi_reduction <add>, %52, %cst_34 [1] : vector<4x128xf32> to vector<4xf32>
      %54 = vector.shape_cast %53 : vector<4xf32> to vector<4x1xf32>
      %55 = arith.addf %51, %54 : vector<4x1xf32>
      %c0_35 = arith.constant 0 : index
      %c0_36 = arith.constant 0 : index
      %56 = vector.load %arg15[%c0_35, %c0_36] : memref<4x1xf32, #tpu.memory_space<vmem>>, vector<4x1xf32>
      tpu.vector_store %arg15[%c0_35, %c0_36], %55 {strides = array<i32>} : memref<4x1xf32, #tpu.memory_space<vmem>>, vector<4x1xf32>,
    } else {
    }
    %c1_i32 = arith.constant 1 : i32
    %8 = arith.cmpi eq, %arg0, %c1_i32 : i32
    %9 = arith.extui %8 : i1 to i32
    %c0_i32_4 = arith.constant 0 : i32
    %10 = arith.cmpi ne, %9, %c0_i32_4 : i32
    scf.if %10 {
      %c0 = arith.constant 0 : index
      %11 = memref.load %arg2[%c0] : memref<1xi32, #tpu.memory_space<smem>>
      %12 = arith.sitofp %11 : i32 to f32
      %c0_5 = arith.constant 0 : index
      %c0_6 = arith.constant 0 : index
      %13 = vector.load %arg14[%c0_5, %c0_6] : memref<4x1xf32, #tpu.memory_space<vmem>>, vector<4x1xf32>
      %14 = vector.broadcast %12 : f32 to vector<4x1xf32>
      %15 = arith.divf %13, %14 : vector<4x1xf32>
      %c0_7 = arith.constant 0 : index
      %c0_8 = arith.constant 0 : index
      %16 = vector.load %arg15[%c0_7, %c0_8] : memref<4x1xf32, #tpu.memory_space<vmem>>, vector<4x1xf32>
      %17 = vector.broadcast %12 : f32 to vector<4x1xf32>
      %18 = arith.divf %16, %17 : vector<4x1xf32>
      %19 = arith.mulf %15, %15 : vector<4x1xf32>
      %20 = arith.subf %18, %19 : vector<4x1xf32>
      %cst = arith.constant 9.99999974E-6 : f32
      %21 = vector.broadcast %cst : f32 to vector<4x1xf32>
      %22 = arith.addf %20, %21 : vector<4x1xf32>
      %23 = math.rsqrt %22 : vector<4x1xf32>
      %24 = arith.index_cast %arg1 : i32 to index
      %c0_9 = arith.constant 0 : index
      %c0_10 = arith.constant 0 : index
      %25 = vector.load %arg13[%24, %c0_9, %c0_10] : memref<1x4x128xf32, #tpu.memory_space<vmem>>, vector<1x4x128xf32>
      %26 = vector.shape_cast %25 : vector<1x4x128xf32> to vector<4x128xf32>
      %27 = vector.broadcast %15 : vector<4x1xf32> to vector<4x128xf32>
      %28 = arith.subf %26, %27 : vector<4x128xf32>
      %29 = vector.broadcast %23 : vector<4x1xf32> to vector<4x128xf32>
      %30 = arith.mulf %28, %29 : vector<4x128xf32>
      %c0_11 = arith.constant 0 : index
      %c0_12 = arith.constant 0 : index
      %31 = vector.load %arg10[%c0_11, %c0_12] : memref<1x4xf32, #tpu.memory_space<vmem>>, vector<1x4xf32>
      %cst_13 = arith.constant dense<0.000000e+00> : vector<1x128xf32>
      %32 = tpu.matmul %31, %30, %cst_13 {dimension_numbers = #tpu.dot_dimension_numbers<[1], [0], [0], [1], [0, 0, 1, 1], [], []>} : vector<1x4xf32>, vector<4x128xf32>, vector<1x128xf32> -> vector<1x128xf32>
      %c0_14 = arith.constant 0 : index
      %c0_15 = arith.constant 0 : index
      %33 = vector.load %arg11[%c0_14, %c0_15] : memref<1x1xf32, #tpu.memory_space<vmem>>, vector<1x1xf32>
      %34 = vector.broadcast %33 : vector<1x1xf32> to vector<1x128xf32>
      %35 = arith.addf %32, %34 : vector<1x128xf32>
      %cst_16 = arith.constant 0.000000e+00 : f32
      %36 = vector.broadcast %cst_16 : f32 to vector<1x128xf32>
      %37 = arith.subf %36, %35 : vector<1x128xf32>
      %38 = math.exp %37 : vector<1x128xf32>
      %cst_17 = arith.constant 1.000000e+00 : f32
      %39 = vector.broadcast %cst_17 : f32 to vector<1x128xf32>
      %40 = arith.addf %39, %38 : vector<1x128xf32>
      %41 = tpu.reciprocal %40 {approx = true} : vector<1x128xf32> -> vector<1x128xf32>
      %c0_18 = arith.constant 0 : index
      %c0_19 = arith.constant 0 : index
      %42 = vector.load %arg12[%c0_18, %c0_19] : memref<1x128xf32, #tpu.memory_space<vmem>>, vector<1x128xf32>
      tpu.vector_store %arg12[%c0_18, %c0_19], %41 {strides = array<i32>} : memref<1x128xf32, #tpu.memory_space<vmem>>, vector<1x128xf32>,
    } else {
    }
    return
  }
  func.func @transform_0(%arg0: i32, %arg1: i32, %arg2: memref<1xi32, #tpu.memory_space<smem>>) -> (i32, i32) {
    %c1_i32 = arith.constant 1 : i32
    %0 = arith.subi %c1_i32, %arg0 : i32
    %1 = arith.muli %arg1, %0 : i32
    %c0_i32 = arith.constant 0 : i32
    %2 = arith.muli %c0_i32, %arg0 : i32
    %3 = arith.addi %1, %2 : i32
    %c0_i32_0 = arith.constant 0 : i32
    %c0_i32_1 = arith.constant 0 : i32
    return %c0_i32_0, %3 : i32, i32
  }
  func.func @transform_1(%arg0: i32, %arg1: i32, %arg2: memref<1xi32, #tpu.memory_space<smem>>) -> (i32, i32) {
    %c0_i32 = arith.constant 0 : i32
    %c0_i32_0 = arith.constant 0 : i32
    %c0_i32_1 = arith.constant 0 : i32
    return %c0_i32, %c0_i32_0 : i32, i32
  }
  func.func @transform_2(%arg0: i32, %arg1: i32, %arg2: memref<1xi32, #tpu.memory_space<smem>>) -> (i32, i32) {
    %c0_i32 = arith.constant 0 : i32
    %c0_i32_0 = arith.constant 0 : i32
    %c0_i32_1 = arith.constant 0 : i32
    return %c0_i32, %c0_i32_0 : i32, i32
  }
  func.func @transform_3(%arg0: i32, %arg1: i32, %arg2: memref<1xi32, #tpu.memory_space<smem>>) -> (i32, i32) {
    %c0_i32 = arith.constant 0 : i32
    %c0_i32_0 = arith.constant 0 : i32
    %c0_i32_1 = arith.constant 0 : i32
    return %c0_i32, %c0_i32_0 : i32, i32
  }
  func.func @transform_4(%arg0: i32, %arg1: i32, %arg2: memref<1xi32, #tpu.memory_space<smem>>) -> (i32, i32) {
    %c0_i32 = arith.constant 0 : i32
    %c0_i32_0 = arith.constant 0 : i32
    %c0_i32_1 = arith.constant 0 : i32
    return %c0_i32, %c0_i32_0 : i32, i32
  }
  func.func @transform_5(%arg0: i32, %arg1: i32, %arg2: memref<1xi32, #tpu.memory_space<smem>>) -> (i32, i32) {
    %c0_i32 = arith.constant 0 : i32
    %c0_i32_0 = arith.constant 0 : i32
    %c0_i32_1 = arith.constant 0 : i32
    return %c0_i32, %c0_i32_0 : i32, i32
  }
  func.func @transform_6(%arg0: i32, %arg1: i32, %arg2: memref<1xi32, #tpu.memory_space<smem>>) -> (i32, i32) {
    %c0_i32 = arith.constant 0 : i32
    %c0_i32_0 = arith.constant 0 : i32
    %c0_i32_1 = arith.constant 0 : i32
    return %c0_i32, %c0_i32_0 : i32, i32
  }
  func.func @transform_7(%arg0: i32, %arg1: i32, %arg2: memref<1xi32, #tpu.memory_space<smem>>) -> (i32, i32) {
    %c0_i32 = arith.constant 0 : i32
    %c0_i32_0 = arith.constant 0 : i32
    %c0_i32_1 = arith.constant 0 : i32
    return %c0_i32, %c0_i32_0 : i32, i32
  }
  func.func @transform_8(%arg0: i32, %arg1: i32, %arg2: memref<1xi32, #tpu.memory_space<smem>>) -> (i32, i32) {
    %c0_i32 = arith.constant 0 : i32
    %c0_i32_0 = arith.constant 0 : i32
    %c0_i32_1 = arith.constant 0 : i32
    return %c0_i32, %c0_i32_0 : i32, i32
  }
  func.func @transform_9(%arg0: i32, %arg1: i32, %arg2: memref<1xi32, #tpu.memory_space<smem>>) -> (i32, i32) {
    %0 = arith.muli %arg0, %arg1 : i32
    %c0_i32 = arith.constant 0 : i32
    %c0_i32_0 = arith.constant 0 : i32
    return %c0_i32, %0 : i32, i32
  }
}

</mosaic_0001>

<bundles_post_ra>
// kernel: tpu_custom_call.1
= control target key start
LH: loop header
LB: loop body
LE: loop exit
PB: predicated region body
PF: predicated region fallthrough
CT: control target
= control target key end

     0   :  { %s1189_s0 = inlined_call_operand.<no memory space> [shape: s32[1], index: 0, kind: input, shape index: {}]   ;;  %s1190_s1 = inlined_call_operand.vmem [shape: f32[13,128], index: 1, kind: input, shape index: {}]   ;;  %s1191_s2 = inlined_call_operand.vmem [shape: f32[16,13], index: 2, kind: input, shape index: {}]   ;;  %s1192_s3 = inlined_call_operand.vmem [shape: f32[16,1], index: 3, kind: input, shape index: {}]   ;;  %s1193_s4 = inlined_call_operand.vmem [shape: f32[8,16], index: 4, kind: input, shape index: {}]   ;;  %s1194_s5 = inlined_call_operand.vmem [shape: f32[8,1], index: 5, kind: input, shape index: {}]   ;;  %s1195_s6 = inlined_call_operand.vmem [shape: f32[4,8], index: 6, kind: input, shape index: {}]   ;;  %s1196_s7 = inlined_call_operand.vmem [shape: f32[4,1], index: 7, kind: input, shape index: {}]   ;;  %s1197_s8 = inlined_call_operand.vmem [shape: f32[1,4], index: 8, kind: input, shape index: {}]   ;;  %s1198_s9 = inlined_call_operand.<no memory space> [shape: f32[1,1], index: 9, kind: input, shape index: {}]   ;;  %s1199_s10 = inlined_call_operand.hbm [shape: f32[1,128], index: 10, kind: output, shape index: {}]  }
   0x1   :  { %15 = sst [smem:[#allocation6]] %s1189_s0  ;;  %v16_v0 = vstv %s1198_s9 }
   0x2   :  { %17 = vst [vmem:[#allocation7] sm:$0x1] %v16_v0 }
   0x3   :  { %18 = vsyncpa [#allocation9], 0 }
   0x4   :  { %20 = vsyncpa [#allocation9 + $0x1], 0  ;;  %s1106_s17 = smov 0   ;;  %s1108_s18 = smov 0  }
   0x5   :  { %s1110_s19 = smov 0  }
   0x6 LB: > { %s874_s0 = sadd.s32 4294967295, %s1035_s19   ;;  %s875_s9 = sadd.s32 4294967294, %s1035_s19   ;;  %s1035_s19 = sphi %s1110_s19, %s26_s19   ;;  %s1031_s18 = sphi %s1108_s18, %s1202_s18   ;;  %s1027_s17 = sphi %s1106_s17, %s1201_s17  }
   0x7   : > { %s38_s20 = sadd.s32 1, %s1031_s18  ;;  %p879_p0 = scmp.ge.s32.totalorder %s1035_s19, 1 }
   0x8   : > { %p40_p1 = scmp.ge.s32.totalorder %s38_s20, 2  ;;  %p315_p2 = scmp.lt.s32.totalorder %s1035_s19, 3 }
   0xa   : > { %s1204_s20 = smov (%p40_p1, %s38_s20), 0  ;;  %p316_p3 = pnand %p879_p0, %p315_p2 }
   0xb   : > { %p360_p4 = scmp.eq.s32.totalorder (!%p316_p3), %s1027_s17, 0 }
   0xc   : > { %319 = sbr.rel (%p316_p3) target bundleno = 1190 (0x4a6), region = 56 }
  0x11   : > { %365 = sbr.rel (!%p360_p4) target bundleno = 22 (0x16), region = 60  ;;  %vm366_vm0 = vcmask (%p360_p4), 3072   ;;  %v1037_v1 = vmov (%p360_p4), 0.0  }
  0x12   : > { %367 = vst.msk [vmem:[#allocation3] sm:$0xf] (%p360_p4), %vm366_vm0, %v1037_v1  ;;  %368 = vst.msk [vmem:[#allocation4] sm:$0xf] (%p360_p4), %vm366_vm0, %v1037_v1 }
  0x16 PF: > { %p881_p5 = scmp.ne.s32.totalorder %s1027_s17, 0 }
  0x17   : > { %s648_s25 = sld [smem:[#allocation6]] (!%p881_p5) }
  0x18   : > { %371 = sbr.rel (%p881_p5) target bundleno = 774 (0x306), region = 64 }
  0x1d   : > { %v373_v2 = vld [vmem:[%s1190_s1 + $0x8] sm:$0x1f]  ;;  %vm395_vm1 = vcmask 1044480   ;;  %v372_v3 = vld [vmem:[%s1190_s1] sm:$0xff]  ;;  %vm388_vm2 = vcmask 105472   ;;  %v1038_v7 = vmov 0   ;;  %v644_v27 = vlaneseq }
  0x1e   : > { %v374_v4 = vld [vmem:[%s1191_s2] sm:$0xff]  ;;  %906 = vmatprep.subr.msk.mxu0 %vm395_vm1, %v373_v2  ;;  %v377_v5 = vld [vmem:[%s1192_s3 + $0x8] sm:$0xff]  ;;  %973 = vset.pattern.permute.xlu0 %v1038_v7  ;;  %v1039_v9 = vmov 0.0   ;;  %vm1040_vm3 = vmmov 0   ;;  %vm483_vm4 = vcmask 130048   ;;  %vm565_vm5 = vcmask 64512  }
  0x1f   : > { %910 = vmatprep.mubr.msk.f32.mxu0 %vm388_vm2, %v374_v4  ;;  %907 = vmatpush3.msk.msra.mxu0 %vm395_vm1, %v373_v2  ;;  %v375_v6 = vld [vmem:[%s1191_s2 + $0x8] sm:$0xff]  ;;  %v376_v8 = vld [vmem:[%s1192_s3] sm:$0xff]  ;;  %v645_v28 = vand.u32 127, %v644_v27  ;;  %v649_v29 = vstv %s648_s25  ;;  %vm653_vm7 = vcmask 1043456   ;;  %vm658_vm8 = vcmask 3072  }
  0x20   : > { %908 = vmatprep.subr.mxu0 %v372_v3  ;;  %385 = vperm.xlu0 %973, %v377_v5   ;;  %v477_v10 = vld [vmem:[%s1194_s5] sm:$0xff]  ;;  %v660_v41 = vld [vmem:[#allocation4] sm:$0xf] }
  0x21   : > { %909 = vmatpush3.msra.mxu0 %v372_v3  ;;  %974 = vset.pattern.permute.xlu1 %v1038_v7  ;;  %v559_v11 = vld [vmem:[%s1196_s7] sm:$0xf]  ;;  %vm650_vm6 = vcmp.lt.s32.totalorder %v645_v28, %v649_v29  ;;  %v652_v39 = vld [vmem:[#allocation3] sm:$0xf] }
  0x22   : > { %911 = vmatmul.mubr.msk.f32.vlgmr.msra.gmra.mxu0 %vm388_vm2, %v375_v6  ;;  %913 = vmatprep.subr.mxu1 %v1039_v9  ;;  %v476_v20 = vld [vmem:[%s1193_s4] sm:$0xff] }
  0x23   : > { %920 = vmatprep.subr.mxu0 %v1039_v9  ;;  %917 = vmatprep.mubr.msk.f32.mxu1 %vm1040_vm3, %v1039_v9  ;;  %v558_v26 = vld [vmem:[%s1195_s6] sm:$0xf] }
  0x24   : > { %380 = vperm.xlu0 %973, %v376_v8   ;;  %922 = vmatprep.mubr.msk.f32.mxu0 %vm1040_vm3, %v1039_v9 }
  0x25   : > { %480 = vperm.xlu1 %974, %v477_v10  }
  0x29   : > { %562 = vperm.xlu1 %974, %v559_v11  }
  0x9b   : > { %v386_v12 = vpop.permute.xlu0 %385 }
  0x9f   : > { %v381_v15 = vpop.permute.xlu0 %380 }
  0xa0   : > { %v481_v21 = vpop.permute.xlu1 %480 }
  0xa4   : > { %v563_v30 = vpop.permute.xlu1 %562 }
  0xe2   : > { %v912_v13 = vpop.f32.mrf.mxu0 }
  0xe3   : > { %v471_v14 = vadd.f32 %v912_v13, %v386_v12 }
  0xe4   : > { %v465_v16 = vpop.f32.mrf.mxu0 }
  0xe5   : > { %v475_v17 = vmax.f32 %v471_v14, 0.0  ;;  %v466_v18 = vadd.f32 %v465_v16, %v381_v15 }
  0xe7   : > { %v474_v19 = vmax.f32 %v466_v18, 0.0  ;;  %914 = vmatpush3.msra.mxu1 %v475_v17 }
  0xe8   : > { %915 = vmatprep.subr.mxu1 %v1039_v9 }
  0xe9   : > { %916 = vmatpush3.msra.mxu1 %v474_v19 }
  0xea   : > { %918 = vmatmul.mubr.msk.f32.vlgmr.msra.gmra.mxu1 %vm483_vm4, %v476_v20 }
 0x1aa   : > { %v553_v22 = vpop.f32.mrf.mxu1 }
 0x1ab   : > { %v554_v23 = vadd.f32 %v553_v22, %v481_v21 }
 0x1ac   : > { %v919_v24 = vpop.f32.mrf.mxu1 }
 0x1ad   : > { %v557_v25 = vmax.f32 %v554_v23, 0.0 }
 0x1af   : > { %921 = vmatpush3.msra.mxu0 %v557_v25 }
 0x1b0   : > { %923 = vmatmul.mubr.msk.f32.vlgmr.msra.gmra.mxu0 %vm565_vm5, %v558_v26 }
 0x270   : > { %v635_v31 = vpop.f32.mrf.mxu0 }
 0x271   : > { %v636_v32 = vadd.f32 %v635_v31, %v563_v30 }
 0x272   : > { %v924_v33 = vpop.f32.mrf.mxu0 }
 0x273   : > { %v639_v34 = vmax.f32 %v636_v32, 0.0 }
 0x275   : > { %642 = vst [vmem:[#allocation2] sm:$0xf] %v639_v34  ;;  %v651_v35 = vsel %vm650_vm6, %v639_v34, 0.0 }
 0x276   : > { %v654_v36 = vsel %vm653_vm7, %v651_v35, 0.0  ;;  %v661_v37 = vmul.f32 %v651_v35, %v651_v35 }
 0x277   : > { %655 = vadd.xlane.f32.xlu0 %v654_v36 }
 0x278   : > { %v662_v38 = vsel %vm653_vm7, %v661_v37, 0.0 }
 0x279   : > { %663 = vadd.xlane.f32.xlu1 %v662_v38 }
 0x300   : > { %v656_v40 = vpop.xlane.xlu0 %655 }
 0x301   : > { %v657_v42 = vadd.f32 %v656_v40, %v652_v39 }
 0x302   : > { %v664_v43 = vpop.xlane.xlu1 %663 }
 0x303   : > { %659 = vst.msk [vmem:[#allocation3] sm:$0xf] %vm658_vm8, %v657_v42  ;;  %v665_v44 = vadd.f32 %v664_v43, %v660_v41 }
 0x305   : > { %666 = vst.msk [vmem:[#allocation4] sm:$0xf] %vm658_vm8, %v665_v44 }
 0x306 PF: > { %p887_p6 = scmp.ne.s32.totalorder %s1027_s17, 1 }
 0x307   : > { %s671_s26 = sld [smem:[#allocation6]] (!%p887_p6) }
 0x308   : > { %670 = sbr.rel (%p887_p6) target bundleno = 1177 (0x499), region = 68 }
 0x30d   : > { %v1041_v45 = vmov 0   ;;  %s672_s27 = scvt.s32.f32 %s671_s26  ;;  %v673_v47 = vld [vmem:[#allocation3] sm:$0xf]  ;;  %v677_v48 = vld [vmem:[#allocation4] sm:$0xf]  ;;  %v1042_v55 = vmov 0.0   ;;  %v705_v0 = vlaneseq }
 0x30e   : > { %975 = vset.pattern.permute.xlu0 %v1041_v45  ;;  %976 = vset.pattern.permute.xlu1 %v1041_v45  ;;  %vm1043_vm9 = vmmov 0   ;;  %v699_v57 = vld [vmem:[#allocation7] sm:$0x1]  ;;  %v685_v59 = vld [vmem:[#allocation2] sm:$0xf]  ;;  %vm713_vm10 = vcmask 1043456  }
 0x30f   : > { %v674_v46 = vstv %s672_s27  ;;  %925 = vmatprep.subr.mxu0 %v1042_v55  ;;  %927 = vmatprep.mubr.msk.f32.mxu0 %vm1043_vm9, %v1042_v55  ;;  %v698_v63 = vld [vmem:[%s1197_s8] sm:$0x1]  ;;  %vm709_vm11 = vcmask 31744   ;;  %v706_v1 = vshrl.u32 %v705_v0, 7 }
 0x310   : > { %977 = vrcp.f32 %v674_v46  ;;  %702 = vperm.xlu1 %976, %v699_v57  }
 0x311   : > { %v707_v2 = vsub.s32 0, %v706_v1 }
 0x31d   : > { %v978_v49 = vpop.eup %977 }
 0x31e   : > { %v676_v50 = vmul.f32 %v978_v49, %v673_v47  ;;  %v678_v51 = vmul.f32 %v978_v49, %v677_v48 }
 0x320   : > { %688 = vperm.xlu0 %975, %v676_v50   ;;  %v679_v52 = vmul.f32 %v676_v50, %v676_v50 }
 0x322   : > { %v680_v53 = vsub.f32 %v678_v51, %v679_v52 }
 0x324   : > { %v681_v54 = vadd.f32 1e-05, %v680_v53 }
 0x326   : > { %979 = vrsqrt.f32 %v681_v54 }
 0x333   : > { %v980_v56 = vpop.eup %979 }
 0x334   : > { %694 = vperm.xlu0 %975, %v980_v56  }
 0x38b   : > { %v703_v3 = vpop.permute.xlu1 %702 }
 0x38c   : > { %v708_v4 = vrot.slane %v703_v3, %v707_v2 }
 0x39b   : > { %v689_v58 = vpop.permute.xlu0 %688 }
 0x39c   : > { %v691_v60 = vsub.f32 %v685_v59, %v689_v58 }
 0x3af   : > { %v695_v61 = vpop.permute.xlu0 %694 }
 0x3b0   : > { %v697_v62 = vmul.f32 %v695_v61, %v691_v60 }
 0x3b2   : > { %926 = vmatpush3.msk.msra.mxu0 %vm713_vm10, %v697_v62 }
 0x3b3   : > { %928 = vmatmul.mubr.msk.f32.vlgmr.msra.gmra.mxu0 %vm709_vm11, %v698_v63 }
 0x473   : > { %v783_v5 = vpop.f32.mrf.mxu0 }
 0x474   : > { %v784_v6 = vadd.f32 %v783_v5, %v708_v4 }
 0x475   : > { %v929_v7 = vpop.f32.mrf.mxu0 }
 0x476   : > { %v787_v8 = vsub.f32 0.0, %v784_v6 }
 0x478   : > { %v788_v9 = vmul.f32 1.442695, %v787_v8 }
 0x47a   : > { %981 = vpow2.f32 %v788_v9 }
 0x487   : > { %v982_v10 = vpop.eup %981 }
 0x488   : > { %v790_v11 = vadd.f32 1.0, %v982_v10 }
 0x48a   : > { %983 = vrcp.f32 %v790_v11 }
 0x497   : > { %v984_v12 = vpop.eup %983 }
 0x498   : > { %792 = vst [vmem:[#allocation8] sm:$0x1] %v984_v12 }
 0x499 PF: > { %p1166_p7 = scmp.eq.s32.totalorder %s874_s0, 1  ;;  %s1044_s30 = smov [#allocation8]  }
 0x49a   : > { %s807_s11 = sshll.u32 %s1044_s30, 4  ;;  %s808_s11 = int_to_ptr.vmem [resolvable:$true] %s807_s11 }
 0x49b   : > { %s985_s12 = scalar_lea.vmem %s808_s11, 16  ;;  %s991_s13 = scalar_lea.vmem %s808_s11, 32 }
 0x49c   : > { %p986_p8 = scmp.ne.s32.totalorder %s808_s11, %s985_s12  ;;  %p992_p11 = scmp.lt.s32.totalorder %s808_s11, %s808_s11 }
 0x49d   : > { %p993_p12 = scmp.lt.s32.totalorder %s991_s13, %s985_s12 }
 0x49e   : > { %p987_p9 = pnand %p986_p8, %p1166_p7 }
 0x49f   : > { %p994_p13 = por %p993_p12, %p992_p11 }
 0x4a0   : > { %p988_p10 = pneg %p987_p9 }
 0x4a2   : > { %p995_p0 = pnand %p994_p13, %p988_p10 }
 0x4a4   : > { %998 = shalt.err (!%p995_p0)
}
 0x4a5   : > { %931 = dma.vmem_to_hbm [thread:$0]  (%p1166_p7), %s808_s11, 16, %s1199_s10, [#allocation9]  }
 0x4a6 PF: > { %p939_p1 = scmp.ge.s32.totalorder %s1035_s19, 2  ;;  %p940_p2 = scmp.eq.s32.totalorder %s875_s9, 1 }
 0x4a8   : > { %p935_p3 = pnand %p940_p2, %p939_p1 }
 0x4aa   : > { %p936_p4 = pneg %p935_p3 }
 0x4ac   : > { %1022 = dma.done.wait (%p936_p4), [#allocation9], 16  }
 0x4ad   : > { %1024 = vsyncadd (%p936_p4), [#allocation9], 4294967280  ;;  %s26_s19 = sadd.s32 1, %s1035_s19   ;;  %s1201_s17 = smov %s1031_s18 }
 0x4ae   : > { %p23_p5 = scmp.ge.s32.totalorder %s26_s19, 4   ;;  %s1202_s18 = smov %s1204_s20 }
 0x4b0   :  { %25 = sbr.rel (!%p23_p5) target bundleno = 6 (0x6), region = 105 }
 0x4b5   :  { %824 = vsyncpa [#allocation9], 1 }
 0x4b6   :  { %826 = vsyncpa [#allocation9 + $0x1], 1 }

</bundles_post_ra>
